<compile_context>
chip_gen: v5e
topology: v5e:2x2
jax: 0.10.0
libtpu: 0.0.40
codegen_flags: <defaults>
</compile_context>

<pallas_src>
import jax
import jax.numpy as jnp
from jax.experimental import pallas as pl
from jax.experimental.pallas import tpu as pltpu

LANES = 128      # vreg lane width (batch maps to lanes)
SUBLANES = 8     # f32 sublane count


def mlp_kernel(ab_ref, x_ref, o_ref):
    # ab_ref : SMEM f32[2] = [a, b] with f(x) = a*x (x >= 0), b*x (x < 0)
    # x_ref  : VMEM (br, 128) lane-dense batch slab
    # o_ref  : VMEM (br, 128) lane-dense output slab
    x = x_ref[...].astype(jnp.float32)
    gain = jnp.where(x >= 0.0, ab_ref[0], ab_ref[1])
    o_ref[...] = (gain * x).astype(o_ref.dtype)


def torch_mlp_forward(x, w0, w1, w2, *, block_rows=4096):
    """x: (B, 1). w0: (4, 1), w1: (2, 4), w2: (1, 2) [torch Linear (out, in) layout].

    Returns y_pred: (B, 1), matching TorchMLP.forward.
    """
    x = jnp.asarray(x)
    B = x.shape[0]
    out_dtype = x.dtype

    # ---- Fold the 14 weight scalars into the two piecewise-linear gains ----
    w0f = jnp.asarray(w0, jnp.float32).reshape(4, 1)
    w1f = jnp.asarray(w1, jnp.float32).reshape(2, 4)
    w2f = jnp.asarray(w2, jnp.float32).reshape(1, 2)

    def _net_scalar(t):
        h0 = jnp.maximum(w0f[:, 0] * t, 0.0)   # (4,)
        h1 = jnp.maximum(w1f @ h0, 0.0)        # (2,)
        return (w2f @ h1)[0]                   # scalar

    a = _net_scalar(jnp.float32(1.0))
    b = -_net_scalar(jnp.float32(-1.0))
    ab = jnp.stack([a, b])                     # f32[2] -> SMEM

    # ---- Lane-dense batch layout: (B, 1) -> (rows, 128) ----
    xflat = x.reshape(B)
    align = LANES * SUBLANES                   # 1024
    if B % align == 0:
        rows = B // LANES                      # zero-copy reshape
        padded = False
    else:
        b_pad = pl.cdiv(B, align) * align      # tail-only zero pad
        xflat = jnp.pad(xflat, (0, b_pad - B))
        rows = b_pad // LANES
        padded = True
    x2d = xflat.reshape(rows, LANES)

    # ---- Tile choice: derive br from rows; guarantee >=2 blocks when possible ----
    br = min(block_rows, rows)
    if rows >= 2 * SUBLANES:
        half = pl.cdiv(pl.cdiv(rows, 2), SUBLANES) * SUBLANES
        br = min(br, half)                     # >= 2 blocks -> both v7x TCs used
    br = max(SUBLANES, (br // SUBLANES) * SUBLANES)
    grid = (pl.cdiv(rows, br),)

    elem_bytes = jnp.dtype(out_dtype).itemsize
    # in + out, double-buffered, plus headroom; capped v7x-safe.
    vmem_need = 2 * 2 * br * LANES * 4
    vmem_limit = min(48 * 1024 * 1024, max(vmem_need + (4 << 20), 16 << 20))

    out2d = pl.pallas_call(
        mlp_kernel,
        out_shape=jax.ShapeDtypeStruct((rows, LANES), out_dtype),
        grid=grid,
        in_specs=[
            # Two folded gains resident in SMEM; read as scalars in the kernel.
            pl.BlockSpec(memory_space=pltpu.MemorySpace.SMEM),
            # Lane-dense batch tile, auto double-buffered over the grid.
            pl.BlockSpec((br, LANES), lambda i: (i, 0)),
        ],
        out_specs=pl.BlockSpec((br, LANES), lambda i: (i, 0)),
        compiler_params=pltpu.CompilerParams(
            dimension_semantics=("parallel",),
            vmem_limit_bytes=vmem_limit,
        ),
        cost_estimate=pl.CostEstimate(
            flops=3 * rows * LANES,            # cmp + select + mul per element
            transcendentals=0,
            bytes_accessed=2 * elem_bytes * rows * LANES + 8,
        ),
    )(ab, x2d)

    if padded:
        return out2d.reshape(-1)[:B].reshape(B, 1)
    return out2d.reshape(B, 1)


if __name__ == "__main__":
    key = jax.random.PRNGKey(0)
    kx, k0, k1, k2 = jax.random.split(key, 4)

    # Deterministic synthetic parameters with nn.Linear weight shapes (out, in).
    w0 = jax.random.uniform(k0, (4, 1), dtype=jnp.float32, minval=-1.0, maxval=1.0)
    w1 = jax.random.uniform(k1, (2, 4), dtype=jnp.float32, minval=-0.5, maxval=0.5)
    w2 = jax.random.uniform(k2, (1, 2), dtype=jnp.float32, minval=-0.7, maxval=0.7)

    def ref_mlp(x):
        r = jnp.maximum(x @ w0.T, 0.0)
        r = jnp.maximum(r @ w1.T, 0.0)
        return r @ w2.T

    # Small unaligned batch (tail-padding path) and an aligned batch
    # (zero-copy fast path, 2-block parallel grid).
    for B in (8, 4096):
        kx, sub = jax.random.split(kx)
        x = jax.random.normal(sub, (B, 1), dtype=jnp.float32)
        y = torch_mlp_forward(x, w0, w1, w2)
        jax.block_until_ready(y)
        assert y.shape == (B, 1)
        assert jnp.allclose(y, ref_mlp(x), atol=1e-5, rtol=1e-5)

    print("KERNEL_OK")
</pallas_src>

<mosaic_0001>
module attributes {stable_mosaic.version = 11 : i64} {
  func.func @mlp_kernel(%arg0: i32, %arg1: memref<2xf32, #tpu.memory_space<smem>>, %arg2: memref<8x128xf32, #tpu.memory_space<vmem>>, %arg3: memref<8x128xf32, #tpu.memory_space<vmem>>) attributes {dimension_semantics = [#tpu.dimension_semantics<parallel>], iteration_bounds = array<i64: 1>, scalar_prefetch = 0 : i64, scratch_operands = 0 : i64, tpu.core_type = #tpu.core_type<tc>, window_params = [{transform_indices = @transform_0, window_bounds = array<i64: 2>}, {transform_indices = @transform_1, window_bounds = array<i64: 8, 128>}, {transform_indices = @transform_2, window_bounds = array<i64: 8, 128>}]} {
    %c0 = arith.constant 0 : index
    %c0_0 = arith.constant 0 : index
    %0 = vector.load %arg2[%c0, %c0_0] : memref<8x128xf32, #tpu.memory_space<vmem>>, vector<8x128xf32>
    %cst = arith.constant 0.000000e+00 : f32
    %1 = vector.broadcast %cst : f32 to vector<8x128xf32>
    %2 = arith.cmpf oge, %0, %1 : vector<8x128xf32>
    %c0_1 = arith.constant 0 : index
    %3 = memref.load %arg1[%c0_1] : memref<2xf32, #tpu.memory_space<smem>>
    %c1 = arith.constant 1 : index
    %4 = memref.load %arg1[%c1] : memref<2xf32, #tpu.memory_space<smem>>
    %5 = vector.broadcast %3 : f32 to vector<8x128xf32>
    %6 = vector.broadcast %4 : f32 to vector<8x128xf32>
    %7 = arith.select %2, %5, %6 : vector<8x128xi1>, vector<8x128xf32>
    %8 = arith.mulf %7, %0 : vector<8x128xf32>
    %c0_2 = arith.constant 0 : index
    %c0_3 = arith.constant 0 : index
    %9 = vector.load %arg3[%c0_2, %c0_3] : memref<8x128xf32, #tpu.memory_space<vmem>>, vector<8x128xf32>
    tpu.vector_store %arg3[%c0_2, %c0_3], %8 {strides = array<i32>} : memref<8x128xf32, #tpu.memory_space<vmem>>, vector<8x128xf32>,
    return
  }
  func.func @transform_0(%arg0: i32) -> i32 {
    %c0_i32 = arith.constant 0 : i32
    %c0_i32_0 = arith.constant 0 : i32
    return %c0_i32 : i32
  }
  func.func @transform_1(%arg0: i32) -> (i32, i32) {
    %c0_i32 = arith.constant 0 : i32
    %c0_i32_0 = arith.constant 0 : i32
    return %arg0, %c0_i32 : i32, i32
  }
  func.func @transform_2(%arg0: i32) -> (i32, i32) {
    %c0_i32 = arith.constant 0 : i32
    %c0_i32_0 = arith.constant 0 : i32
    return %arg0, %c0_i32 : i32, i32
  }
}

</mosaic_0001>

<bundles_post_ra>
// kernel: tpu_custom_call.1
= control target key start
LH: loop header
LB: loop body
LE: loop exit
PB: predicated region body
PF: predicated region fallthrough
CT: control target
= control target key end

     0   :  { %7 = vsyncpa [#allocation5], 0  ;;  %s163_s0 = inlined_call_operand.hbm [shape: f32[2], index: 0, kind: input, shape index: {}]   ;;  %s164_s1 = inlined_call_operand.hbm [shape: f32[8,128], index: 1, kind: input, shape index: {}]   ;;  %s165_s2 = inlined_call_operand.hbm [shape: f32[8,128], index: 2, kind: output, shape index: {}]  }
   0x1   :  { %8 = vsyncpa [#allocation3], 0 }
   0x2   :  { %9 = vsyncpa [#allocation4], 0  ;;  %s15_s11 = sshll.u32 %s163_s0, 4  ;;  %s24_s14 = sshll.u32 %s164_s1, 4  ;;  %s16_s11 = int_to_ptr.hbm [resolvable:$true] %s15_s11  ;;  %s25_s14 = int_to_ptr.hbm [resolvable:$true] %s24_s14 }
   0x3   :  { %s136_s15 = smov [#allocation2]   ;;  %s137_s16 = smov [#allocation6]  }
   0x4   :  { %18 = dma.hbm_to_smem %s16_s11, 16, %s136_s15, [#allocation5]  }
   0x5   :  { %s26_s17 = sshll.u32 %s137_s16, 4  ;;  %s27_s17 = int_to_ptr.vmem [resolvable:$true] %s26_s17 }
   0x6   :  { %29 = dma.hbm_to_vmem [thread:$0]  %s25_s14, 128, %s27_s17, [#allocation3]  }
   0x7   :  { %130 = dma.done.wait [#allocation5], 16  }
   0x8   :  { %131 = vsyncadd [#allocation5], 4294967280 }
   0x9   :  { %132 = dma.done.wait [#allocation3], 128  }
   0xa   :  { %133 = vsyncadd [#allocation3], 4294967168 }
   0xb   :  { %38 = sfence }
   0xc   :  { %s41_s18 = sld [smem:[#allocation2]]  ;;  %v39_v0 = vld [vmem:[#allocation6] sm:$0xff]  ;;  %s138_s0 = smov [#allocation7]  }
   0xd   :  { %s66_s19 = sld [smem:[#allocation2 + $0x1]]  ;;  %vm40_vm0 = vcmp.ge.f32.partialorder %v39_v0, 0.0  ;;  %s53_s20 = sshll.u32 %s138_s0, 4  ;;  %s54_s20 = int_to_ptr.vmem [resolvable:$true] %s53_s20 }
   0xe   :  { %s55_s22 = sshll.u32 %s165_s2, 4  ;;  %s56_s22 = int_to_ptr.hbm [resolvable:$true] %s55_s22 }
  0x12   :  { %v43_v1 = vstv %s41_s18 }
  0x13   :  { %v44_v2 = vstv %s66_s19 }
  0x14   :  { %v45_v3 = vsel %vm40_vm0, %v43_v1, %v44_v2 }
  0x15   :  { %v46_v4 = vmul.f32 %v45_v3, %v39_v0 }
  0x17   :  { %47 = vst [vmem:[#allocation7] sm:$0xff] %v46_v4 }
  0x18   :  { %58 = dma.vmem_to_hbm [thread:$0]  %s54_s20, 128, %s56_s22, [#allocation4]  }
  0x19   :  { %134 = dma.done.wait [#allocation4], 128  }
  0x1a   :  { %135 = vsyncadd [#allocation4], 4294967168 }
  0x1b   :  { %63 = vsyncpa [#allocation3], 1 }
  0x1c   :  { %64 = vsyncpa [#allocation4], 1 }
  0x1d   :  { %65 = vsyncpa [#allocation5], 1 }

</bundles_post_ra>
